<compile_context>
chip_gen: v6e
topology: v6e:2x2x1
jax: 0.10.0
libtpu: 0.0.40
codegen_flags: <defaults>
</compile_context>

<pallas_src>
import functools

import jax
import jax.numpy as jnp
from jax.experimental import pallas as pl
from jax.experimental.pallas import tpu as pltpu


_LANE = 128
_SUBLANE = 8
_TP_MAX = 32768                      # max flattened-spatial lanes per tile
_TN_MAX = 32                         # max Gaussians per tile (vreg pressure)
_TARGET_BLOCK_BYTES = 2 * 1024 * 1024  # ~2 MiB f32 output block


def _round_up(x, m):
    return ((x + m - 1) // m) * m


def _warped_gaussian_kernel(params_ref, coords_ref, o_ref, *, tn):
    # params_ref: VMEM (N_round, 8), fully resident:
    #   [amplitude, center_y, center_x, cos(wa), sin(wa), warp,
    #    -1/(2*sigma_x^2), -1/(2*sigma_y^2)]
    # coords_ref: VMEM (2, TP): row 0 = y, row 1 = x (flattened spatial axis).
    # o_ref:      VMEM (TN, TP) output tile (TN Gaussians x TP pixels).
    n = pl.program_id(1)
    row0 = pl.multiple_of(n * tn, tn)
    p = params_ref[pl.ds(row0, tn), :]          # (TN, 8)

    amp = p[:, 0:1]
    cy = p[:, 1:2]
    cx = p[:, 2:3]
    ca = p[:, 3:4]
    sa = p[:, 4:5]
    warp = p[:, 5:6]
    ni2sx2 = p[:, 6:7]                          # -1 / (2 * sigma_x^2)
    ni2sy2 = p[:, 7:8]                          # -1 / (2 * sigma_y^2)

    gy = coords_ref[0:1, :]                     # (1, TP)
    gx = coords_ref[1:2, :]                     # (1, TP)

    dx = gx - cx                                # (TN, TP) via broadcast
    dy = gy - cy
    u = dx * ca - dy * sa
    v = dx * sa + dy * ca
    v2 = v * v
    t = u - warp * v2
    # Negated coefficients -> no per-element negate; one EUP exp per element.
    o_ref[...] = amp * jnp.exp(t * t * ni2sx2 + v2 * ni2sy2)


def warped_gaussian_2d(grid_yx, amplitude, center_y, center_x,
                       sigma_y, sigma_x, warp, warp_angle,
                       *, tp_max=_TP_MAX, tn_max=_TN_MAX):
    """Pallas implementation of WarpedGaussian2D.forward.

    grid_yx: (H, W, 2) float array in yx order.
    all parameters: (N,) float arrays (same shape).
    returns: (N, H, W) float32.
    """
    H, W, _ = grid_yx.shape
    N = amplitude.shape[0]
    P = H * W
    f32 = jnp.float32

    # Hoist per-Gaussian scalar math out of the kernel (N-sized, cheap).
    amp = amplitude.astype(f32)
    cy = center_y.astype(f32)
    cx = center_x.astype(f32)
    sy = sigma_y.astype(f32)
    sx = sigma_x.astype(f32)
    w = warp.astype(f32)
    wa = warp_angle.astype(f32)
    params = jnp.stack(
        [amp, cy, cx, jnp.cos(wa), jnp.sin(wa), w,
         -1.0 / (2.0 * sx * sx), -1.0 / (2.0 * sy * sy)],
        axis=-1,
    )                                              # (N, 8)

    # Tile selection: lane-dense TP first, then TN so the block is ~2 MiB.
    TP = min(_round_up(P, _LANE), _round_up(tp_max, _LANE))
    tn_byte_cap = max(_SUBLANE,
                      (_TARGET_BLOCK_BYTES // (TP * 4)) // _SUBLANE * _SUBLANE)
    TN = max(_SUBLANE, min(tn_max, _round_up(N, _SUBLANE), tn_byte_cap))

    # Pad params AFTER the reciprocal/cos/sin so padded rows are finite zeros
    # (amp 0 -> output 0); padded output rows are masked away anyway.
    N_round = _round_up(N, TN)
    params = jnp.pad(params, ((0, N_round - N), (0, 0)))

    # (2, P) coordinate table: row 0 = y, row 1 = x.  No spatial padding —
    # Pallas masks the ragged edge blocks, so no post-kernel slice copy.
    coords = grid_yx.reshape(P, 2).T.astype(f32)

    # Spatial axis first (more blocks -> even megacore split on v7x);
    # Gaussian axis innermost so the coords block stays VMEM-resident.
    grid = (pl.cdiv(P, TP), pl.cdiv(N, TN))

    out = pl.pallas_call(
        functools.partial(_warped_gaussian_kernel, tn=TN),
        out_shape=jax.ShapeDtypeStruct((N, P), f32),
        grid=grid,
        in_specs=[
            pl.BlockSpec((N_round, 8), lambda p, n: (0, 0)),   # params: resident
            pl.BlockSpec((2, TP), lambda p, n: (0, p)),        # coords: resident over n
        ],
        out_specs=pl.BlockSpec((TN, TP), lambda p, n: (n, p)),
        compiler_params=pltpu.CompilerParams(
            dimension_semantics=("parallel", "parallel"),
            vmem_limit_bytes=32 * 1024 * 1024,
        ),
        cost_estimate=pl.CostEstimate(
            flops=16 * N * P,
            transcendentals=N * P,
            bytes_accessed=4 * N * P + 8 * P + 32 * N_round,
        ),
    )(params, coords)

    return out.reshape(N, H, W)


def _reference(grid_yx, amplitude, center_y, center_x,
               sigma_y, sigma_x, warp, warp_angle):
    """Pure-JAX transliteration of the PyTorch forward (for verification)."""
    gx = grid_yx[..., 1][:, :, None]
    gy = grid_yx[..., 0][:, :, None]
    a = amplitude[None, None, :]
    cy = center_y[None, None, :]
    cx = center_x[None, None, :]
    sy = sigma_y[None, None, :]
    sx = sigma_x[None, None, :]
    w = warp[None, None, :]
    wa = warp_angle[None, None, :]
    u = (gx - cx) * jnp.cos(wa) - (gy - cy) * jnp.sin(wa)
    v = (gx - cx) * jnp.sin(wa) + (gy - cy) * jnp.cos(wa)
    g = a * jnp.exp(-((u - w * v**2) ** 2 / (2 * sx**2) + v**2 / (2 * sy**2)))
    return jnp.transpose(g, (2, 0, 1))


if __name__ == "__main__":
    key = jax.random.PRNGKey(0)

    def make_inputs(H, W, N, k):
        ys = jnp.arange(H, dtype=jnp.float32)
        xs = jnp.arange(W, dtype=jnp.float32)
        yy, xx = jnp.meshgrid(ys, xs, indexing="ij")
        grid = jnp.stack([yy, xx], axis=-1)      # (H, W, 2), [...,0]=y, [...,1]=x
        ks = jax.random.split(k, 7)
        amplitude = 1.0 + 0.5 * jax.random.uniform(ks[0], (N,), jnp.float32)
        center_y = jax.random.uniform(ks[1], (N,), jnp.float32) * (H - 1)
        center_x = jax.random.uniform(ks[2], (N,), jnp.float32) * (W - 1)
        sigma_y = 1.0 + jax.random.uniform(ks[3], (N,), jnp.float32) * 2.0
        sigma_x = 1.0 + jax.random.uniform(ks[4], (N,), jnp.float32) * 2.0
        warp = 0.1 * jax.random.normal(ks[5], (N,), jnp.float32)
        warp_angle = jax.random.uniform(ks[6], (N,), jnp.float32) * 2.0
        return grid, (amplitude, center_y, center_x, sigma_y, sigma_x,
                      warp, warp_angle)

    k1, k2 = jax.random.split(key)

    # Case 1: small aligned image (module-typical shapes).
    grid1, p1 = make_inputs(16, 16, 4, k1)
    out1 = jax.block_until_ready(warped_gaussian_2d(grid1, *p1))
    ref1 = _reference(grid1, *p1)
    assert out1.shape == (4, 16, 16), out1.shape
    assert out1.dtype == jnp.float32
    assert jnp.allclose(out1, ref1, atol=1e-5, rtol=1e-5), \
        float(jnp.max(jnp.abs(out1 - ref1)))

    # Case 2: ragged N and H*W with small forced tiles, exercising the
    # multi-block grid, coord-block residency and masked edge stores.
    grid2, p2 = make_inputs(21, 37, 12, k2)
    out2 = jax.block_until_ready(
        warped_gaussian_2d(grid2, *p2, tp_max=256, tn_max=8))
    ref2 = _reference(grid2, *p2)
    assert out2.shape == (12, 21, 37), out2.shape
    assert out2.dtype == jnp.float32
    assert jnp.allclose(out2, ref2, atol=1e-5, rtol=1e-5), \
        float(jnp.max(jnp.abs(out2 - ref2)))

    print("KERNEL_OK")
</pallas_src>

<mosaic_0001>
module attributes {stable_mosaic.version = 11 : i64} {
  func.func @_warped_gaussian_kernel(%arg0: i32, %arg1: i32, %arg2: memref<8x8xf32, #tpu.memory_space<vmem>>, %arg3: memref<2x256xf32, #tpu.memory_space<vmem>>, %arg4: memref<8x256xf32, #tpu.memory_space<vmem>>) attributes {dimension_semantics = [#tpu.dimension_semantics<parallel>, #tpu.dimension_semantics<parallel>], iteration_bounds = array<i64: 1, 1>, scalar_prefetch = 0 : i64, scratch_operands = 0 : i64, tpu.core_type = #tpu.core_type<tc>, window_params = [{pipeline_mode = #tpu.pipeline_mode<synchronous>, transform_indices = @transform_0, window_bounds = array<i64: 8, 8>}, {transform_indices = @transform_1, window_bounds = array<i64: 2, 256>}, {transform_indices = @transform_2, window_bounds = array<i64: 8, 256>}]} {
    %c8_i32 = arith.constant 8 : i32
    %0 = arith.muli %arg1, %c8_i32 : i32
    %1 = tpu.assume_multiple %0, 8 : i32
    %2 = arith.index_cast %1 : i32 to index
    %c0 = arith.constant 0 : index
    %3 = vector.load %arg2[%2, %c0] : memref<8x8xf32, #tpu.memory_space<vmem>>, vector<8x8xf32>
    %4 = vector.extract_strided_slice %3 {offsets = [0, 0], sizes = [8, 1], strides = [1, 1]} : vector<8x8xf32> to vector<8x1xf32>
    %5 = vector.extract_strided_slice %3 {offsets = [0, 1], sizes = [8, 1], strides = [1, 1]} : vector<8x8xf32> to vector<8x1xf32>
    %6 = vector.extract_strided_slice %3 {offsets = [0, 2], sizes = [8, 1], strides = [1, 1]} : vector<8x8xf32> to vector<8x1xf32>
    %7 = vector.extract_strided_slice %3 {offsets = [0, 3], sizes = [8, 1], strides = [1, 1]} : vector<8x8xf32> to vector<8x1xf32>
    %8 = vector.extract_strided_slice %3 {offsets = [0, 4], sizes = [8, 1], strides = [1, 1]} : vector<8x8xf32> to vector<8x1xf32>
    %9 = vector.extract_strided_slice %3 {offsets = [0, 5], sizes = [8, 1], strides = [1, 1]} : vector<8x8xf32> to vector<8x1xf32>
    %10 = vector.extract_strided_slice %3 {offsets = [0, 6], sizes = [8, 1], strides = [1, 1]} : vector<8x8xf32> to vector<8x1xf32>
    %11 = vector.extract_strided_slice %3 {offsets = [0, 7], sizes = [8, 1], strides = [1, 1]} : vector<8x8xf32> to vector<8x1xf32>
    %c0_0 = arith.constant 0 : index
    %c0_1 = arith.constant 0 : index
    %12 = vector.load %arg3[%c0_0, %c0_1] : memref<2x256xf32, #tpu.memory_space<vmem>>, vector<1x256xf32>
    %c1 = arith.constant 1 : index
    %c0_2 = arith.constant 0 : index
    %13 = vector.load %arg3[%c1, %c0_2] : memref<2x256xf32, #tpu.memory_space<vmem>>, vector<1x256xf32>
    %14 = vector.broadcast %13 : vector<1x256xf32> to vector<8x256xf32>
    %15 = vector.broadcast %6 : vector<8x1xf32> to vector<8x256xf32>
    %16 = arith.subf %14, %15 : vector<8x256xf32>
    %17 = vector.broadcast %12 : vector<1x256xf32> to vector<8x256xf32>
    %18 = vector.broadcast %5 : vector<8x1xf32> to vector<8x256xf32>
    %19 = arith.subf %17, %18 : vector<8x256xf32>
    %20 = vector.broadcast %7 : vector<8x1xf32> to vector<8x256xf32>
    %21 = arith.mulf %16, %20 : vector<8x256xf32>
    %22 = vector.broadcast %8 : vector<8x1xf32> to vector<8x256xf32>
    %23 = arith.mulf %19, %22 : vector<8x256xf32>
    %24 = arith.subf %21, %23 : vector<8x256xf32>
    %25 = vector.broadcast %8 : vector<8x1xf32> to vector<8x256xf32>
    %26 = arith.mulf %16, %25 : vector<8x256xf32>
    %27 = vector.broadcast %7 : vector<8x1xf32> to vector<8x256xf32>
    %28 = arith.mulf %19, %27 : vector<8x256xf32>
    %29 = arith.addf %26, %28 : vector<8x256xf32>
    %30 = arith.mulf %29, %29 : vector<8x256xf32>
    %31 = vector.broadcast %9 : vector<8x1xf32> to vector<8x256xf32>
    %32 = arith.mulf %31, %30 : vector<8x256xf32>
    %33 = arith.subf %24, %32 : vector<8x256xf32>
    %34 = arith.mulf %33, %33 : vector<8x256xf32>
    %35 = vector.broadcast %10 : vector<8x1xf32> to vector<8x256xf32>
    %36 = arith.mulf %34, %35 : vector<8x256xf32>
    %37 = vector.broadcast %11 : vector<8x1xf32> to vector<8x256xf32>
    %38 = arith.mulf %30, %37 : vector<8x256xf32>
    %39 = arith.addf %36, %38 : vector<8x256xf32>
    %40 = math.exp %39 : vector<8x256xf32>
    %41 = vector.broadcast %4 : vector<8x1xf32> to vector<8x256xf32>
    %42 = arith.mulf %41, %40 : vector<8x256xf32>
    %c0_3 = arith.constant 0 : index
    %c0_4 = arith.constant 0 : index
    %43 = vector.load %arg4[%c0_3, %c0_4] : memref<8x256xf32, #tpu.memory_space<vmem>>, vector<8x256xf32>
    tpu.vector_store %arg4[%c0_3, %c0_4], %42 {strides = array<i32>} : memref<8x256xf32, #tpu.memory_space<vmem>>, vector<8x256xf32>,
    return
  }
  func.func @transform_0(%arg0: i32, %arg1: i32) -> (i32, i32) {
    %c0_i32 = arith.constant 0 : i32
    %c0_i32_0 = arith.constant 0 : i32
    %c0_i32_1 = arith.constant 0 : i32
    return %c0_i32, %c0_i32_0 : i32, i32
  }
  func.func @transform_1(%arg0: i32, %arg1: i32) -> (i32, i32) {
    %c0_i32 = arith.constant 0 : i32
    %c0_i32_0 = arith.constant 0 : i32
    return %c0_i32, %arg0 : i32, i32
  }
  func.func @transform_2(%arg0: i32, %arg1: i32) -> (i32, i32) {
    %c0_i32 = arith.constant 0 : i32
    return %arg1, %arg0 : i32, i32
  }
}

</mosaic_0001>

<bundles_post_ra>
// kernel: tpu_custom_call.1
= control target key start
LH: loop header
LB: loop body
LE: loop exit
PB: predicated region body
PF: predicated region fallthrough
CT: control target
= control target key end

     0   :  { %7 = vsyncpa [#allocation3], 0  ;;  %s288_s0 = inlined_call_operand.hbm [shape: f32[8,8], index: 0, kind: input, shape index: {}]   ;;  %s289_s1 = inlined_call_operand.hbm [shape: f32[2,256], index: 1, kind: input, shape index: {}]   ;;  %s290_s2 = inlined_call_operand.hbm [shape: f32[4,256], index: 2, kind: output, shape index: {}]  }
   0x1   :  { %8 = vsyncpa [#allocation6], 0 }
   0x2   :  { %9 = vsyncpa [#allocation4], 0  ;;  %s251_s9 = smov [#allocation2]   ;;  %s252_s11 = smov [#allocation5]  }
   0x3   :  { %s16_s10 = sshll.u32 %s251_s9, 4  ;;  %s26_s12 = sshll.u32 %s252_s11, 4  ;;  %s17_s10 = int_to_ptr.vmem [resolvable:$true] %s16_s10  ;;  %s27_s12 = int_to_ptr.vmem [resolvable:$true] %s26_s12 }
   0x4   :  { %s193_s13 = scalar_lea.vmem %s17_s10, 128  ;;  %p198_p1 = scmp.lt.s32.totalorder %s17_s10, %s17_s10 }
   0x5   :  { %p194_p0 = scmp.ne.s32.totalorder %s17_s10, %s193_s13  ;;  %p199_p2 = scmp.lt.s32.totalorder %s193_s13, %s193_s13 }
   0x7   :  { %p200_p3 = por %p199_p2, %p198_p1 }
   0x9   :  { %p201_p4 = pnand %p200_p3, %p194_p0 }
   0xb   :  { %204 = shalt.err (!%p201_p4)
}
   0xc   :  { %19 = dma.hbm_to_vmem [thread:$0]  %s288_s0, 128, %s17_s10, [#allocation3]  }
   0xd   :  { %s213_s16 = scalar_lea.vmem %s27_s12, 64  ;;  %p218_p6 = scmp.lt.s32.totalorder %s27_s12, %s27_s12 }
   0xe   :  { %p214_p5 = scmp.ne.s32.totalorder %s27_s12, %s213_s16  ;;  %p219_p7 = scmp.lt.s32.totalorder %s213_s16, %s213_s16 }
  0x10   :  { %p220_p8 = por %p219_p7, %p218_p6 }
  0x12   :  { %p221_p9 = pnand %p220_p8, %p214_p5 }
  0x14   :  { %224 = shalt.err (!%p221_p9)
}
  0x15   :  { %29 = dma.hbm_to_vmem [thread:$0]  %s289_s1, 64, %s27_s12, [#allocation6]  }
  0x16   :  { %245 = dma.done.wait [#allocation3], 128  }
  0x17   :  { %246 = vsyncadd [#allocation3], 4294967168 }
  0x18   :  { %247 = dma.done.wait [#allocation6], 64  }
  0x19   :  { %248 = vsyncadd [#allocation6], 4294967232  ;;  %v253_v0 = vmov 3   ;;  %v254_v1 = vmov 2   ;;  %v38_v2 = vld [vmem:[#allocation2] sm:$0xff]  ;;  %v255_v3 = vmov 4   ;;  %v43_v9 = vlaneseq }
  0x1a   :  { %174 = vset.pattern.permute.xlu1 %v253_v0  ;;  %172 = vset.pattern.permute.xlu0 %v254_v1  ;;  %v256_v4 = vmov 1   ;;  %v257_v5 = vmov 5   ;;  %v258_v6 = vmov 6   ;;  %v259_v7 = vmov 7  }
  0x1b   :  { %78 = vperm.xlu1 %174, %v38_v2   ;;  %55 = vperm.xlu0 %172, %v38_v2   ;;  %v260_v8 = vmov 0   ;;  %v44_v10 = vshrl.u32 %v43_v9, 7  ;;  %v41_v13 = vld [vmem:[#allocation5 + $0x1] ss:$2 sm:$0x3] }
  0x1c   :  { %v39_v14 = vld [vmem:[#allocation5] ss:$2 sm:$0x3] }
  0x1d   :  { %v45_v11 = vsub.s32 0, %v44_v10  ;;  %v49_v12 = vsub.s32 1, %v44_v10 }
  0x1f   :  { %175 = vset.pattern.permute.xlu1 %v255_v3  ;;  %173 = vset.pattern.permute.xlu0 %v256_v4  ;;  %v46_v17 = vrot.slane %v41_v13, %v45_v11  ;;  %v50_v18 = vrot.slane %v41_v13, %v49_v12  ;;  %v64_v19 = vrot.slane %v39_v14, %v45_v11 }
  0x20   :  { %84 = vperm.xlu1 %175, %v38_v2   ;;  %72 = vperm.xlu0 %173, %v38_v2   ;;  %v68_v20 = vrot.slane %v39_v14, %v49_v12 }
  0x24   :  { %176 = vset.pattern.permute.xlu1 %v257_v5  ;;  %177 = vset.pattern.permute.xlu0 %v258_v6 }
  0x25   :  { %100 = vperm.xlu1 %176, %v38_v2   ;;  %110 = vperm.xlu0 %177, %v38_v2  }
  0x29   :  { %178 = vset.pattern.permute.xlu1 %v259_v7  ;;  %180 = vset.pattern.permute.xlu0 %v260_v8 }
  0x2a   :  { %116 = vperm.xlu1 %178, %v38_v2  }
  0x2e   :  { %179 = vset.pattern.permute.xlu1 %v260_v8 }
  0x2f   :  { %128 = vperm.xlu1 %179, %v38_v2  }
  0x96   :  { %v56_v15 = vpop.permute.xlu0 %55  ;;  %v79_v16 = vpop.permute.xlu1 %78 }
  0x97   :  { %v58_v23 = vsub.f32 %v46_v17, %v56_v15  ;;  %v59_v24 = vsub.f32 %v50_v18, %v56_v15 }
  0x99   :  { %v81_v36 = vmul.f32 %v79_v16, %v58_v23  ;;  %v82_v37 = vmul.f32 %v79_v16, %v59_v24 }
  0x9b   :  { %v85_v21 = vpop.permute.xlu1 %84  ;;  %v73_v22 = vpop.permute.xlu0 %72 }
  0x9c   :  { %v75_v25 = vsub.f32 %v64_v19, %v73_v22  ;;  %v76_v26 = vsub.f32 %v68_v20, %v73_v22  ;;  %v91_v27 = vmul.f32 %v85_v21, %v58_v23  ;;  %v92_v28 = vmul.f32 %v85_v21, %v59_v24 }
  0x9e   :  { %v93_v29 = vmul.f32 %v79_v16, %v75_v25  ;;  %v94_v30 = vmul.f32 %v79_v16, %v76_v26  ;;  %v87_v31 = vmul.f32 %v85_v21, %v75_v25  ;;  %v88_v32 = vmul.f32 %v85_v21, %v76_v26 }
  0xa0   :  { %v95_v33 = vadd.f32 %v93_v29, %v91_v27  ;;  %v96_v34 = vadd.f32 %v94_v30, %v92_v28  ;;  %v101_v35 = vpop.permute.xlu1 %100  ;;  %v89_v42 = vsub.f32 %v81_v36, %v87_v31  ;;  %v90_v43 = vsub.f32 %v82_v37, %v88_v32  ;;  %v111_v47 = vpop.permute.xlu0 %110 }
  0xa2   :  { %v97_v38 = vmul.f32 %v95_v33, %v95_v33  ;;  %v98_v39 = vmul.f32 %v96_v34, %v96_v34 }
  0xa4   :  { %v103_v40 = vmul.f32 %v101_v35, %v97_v38  ;;  %v104_v41 = vmul.f32 %v101_v35, %v98_v39 }
  0xa5   :  { %v117_v46 = vpop.permute.xlu1 %116 }
  0xa6   :  { %v105_v44 = vsub.f32 %v89_v42, %v103_v40  ;;  %v106_v45 = vsub.f32 %v90_v43, %v104_v41  ;;  %v119_v50 = vmul.f32 %v117_v46, %v97_v38  ;;  %v120_v51 = vmul.f32 %v117_v46, %v98_v39 }
  0xa8   :  { %v107_v48 = vmul.f32 %v105_v44, %v105_v44  ;;  %v108_v49 = vmul.f32 %v106_v45, %v106_v45 }
  0xaa   :  { %v113_v52 = vmul.f32 %v111_v47, %v107_v48  ;;  %v114_v53 = vmul.f32 %v111_v47, %v108_v49  ;;  %v129_v58 = vpop.permute.xlu1 %128 }
  0xac   :  { %v121_v54 = vadd.f32 %v119_v50, %v113_v52  ;;  %v122_v55 = vadd.f32 %v120_v51, %v114_v53 }
  0xae   :  { %v123_v56 = vmul.f32 1.442695, %v121_v54  ;;  %v125_v57 = vmul.f32 1.442695, %v122_v55 }
  0xb0   :  { %181 = vpow2.f32 %v123_v56 }
  0xb1   :  { %183 = vpow2.f32 %v125_v57 }
  0xbd   :  { %v182_v59 = vpop.eup %181 }
  0xbe   :  { %v184_v60 = vpop.eup %183  ;;  %v131_v61 = vmul.f32 %v182_v59, %v129_v58 }
  0xbf   :  { %v132_v62 = vmul.f32 %v184_v60, %v129_v58 }
  0xc1   :  { %v135_v63 = vcombine.low %v131_v61, %v132_v62  ;;  %v136_v0 = vcombine.high %v131_v61, %v132_v62 }
  0xc3   :  { %139 = vst [vmem:[#allocation7] sm:$0xff] %v135_v63  ;;  %140 = vst [vmem:[#allocation7 + $0x8] sm:$0xff] %v136_v0 }
  0xc4   :  { %145 = vsyncadd [#allocation4], 128  ;;  %s261_s0 = smov [#allocation7]  }
  0xc5   :  { %s146_s1 = sshll.u32 %s261_s0, 4  ;;  %s147_s1 = int_to_ptr.vmem [resolvable:$true] %s146_s1 }
  0xc6   :  { %s225_s19 = scalar_lea.vmem %s147_s1, 128  ;;  %s229_s20 = scalar_lea.vmem %s147_s1, 256 }
  0xc7   :  { %p226_p10 = scmp.ne.s32.totalorder %s147_s1, %s225_s19  ;;  %p230_p11 = scmp.lt.s32.totalorder %s147_s1, %s147_s1 }
  0xc8   :  { %p231_p12 = scmp.lt.s32.totalorder %s229_s20, %s225_s19 }
  0xca   :  { %p232_p13 = por %p231_p12, %p230_p11 }
  0xcc   :  { %p233_p0 = pnand %p232_p13, %p226_p10 }
  0xce   :  { %236 = shalt.err (!%p233_p0)
}
  0xcf   :  { %s262_s21 = smov 128   ;;  %s263_s22 = smov 8  }
  0xd0   :  { %152 = dma.vmem_to_hbm [thread:$0]  %s147_s1, 128, %s290_s2, [#allocation4], %s262_s21, %s262_s21, %s263_s22  }
  0xd1   :  { %249 = dma.done.wait [#allocation4], 256  }
  0xd2   :  { %250 = vsyncadd [#allocation4], 4294967040 }
  0xd3   :  { %156 = vsyncpa [#allocation3], 1 }
  0xd4   :  { %157 = vsyncpa [#allocation6], 1 }
  0xd5   :  { %158 = vsyncpa [#allocation4], 1 }

</bundles_post_ra>
